<compile_context>
chip_gen: v6e
topology: v6e:2x2x1
jax: 0.10.0
libtpu: 0.0.40
codegen_flags: <defaults>
</compile_context>

<pallas_src>
import functools
import math

import jax
import jax.numpy as jnp
from jax.experimental import pallas as pl
from jax.experimental.pallas import tpu as pltpu


def _fr_block_kernel(p_chunk, x_ref, w_ref, b_ref, o_ref):
    """One (m-chunk, batch-chunk) tile of the row-wise linear layer.

    x_ref: (TB, P, TM)   inputs  (series m on lanes, contraction P on sublanes)
    w_ref: (W,  P, TM)   weights (same layout, pre_win leading)
    b_ref: (W,  TM)      bias    (series on lanes)
    o_ref: (TB, W, TM)   output  (series on lanes -> one lane-dense store)
    """
    P = x_ref.shape[1]
    W = w_ref.shape[0]
    n_chunks = max(1, -(-P // p_chunk))          # static

    accs = [None] * W
    for c in range(n_chunks):                    # static unrolled P-chunk loop
        lo = c * p_chunk
        hi = min(P, lo + p_chunk)
        xc = x_ref[:, lo:hi, :]                  # (TB, pc, TM)
        for wi in range(W):                      # pre_win is small & static
            wc = w_ref[wi:wi + 1, lo:hi, :]      # (1, pc, TM)
            # multiply in the input dtype, accumulate in f32; the reduction is
            # over the sublane (P) axis -> VALU vreg adds + one 8-wide reduce.
            part = jnp.sum((xc * wc).astype(jnp.float32),
                           axis=1, keepdims=True)            # (TB, 1, TM)
            accs[wi] = part if accs[wi] is None else accs[wi] + part

    rows = [accs[wi] + b_ref[wi:wi + 1, :].astype(jnp.float32)   # (TB, 1, TM)
            for wi in range(W)]
    out = rows[0] if W == 1 else jnp.concatenate(rows, axis=1)   # (TB, W, TM)
    o_ref[...] = out.astype(o_ref.dtype)


def _round_up(v, n):
    return ((v + n - 1) // n) * n


def _vmem_capacity_bytes():
    try:
        info = pltpu.get_tpu_info()
        cap = getattr(info, "vmem_capacity_bytes", None)
        if cap:
            return int(cap)
    except Exception:
        pass
    return 64 * 1024 * 1024        # conservative fallback: v7x per-TC VMEM


def _vmem_plan():
    """Return (working-set budget, vmem_limit_bytes), generation-aware."""
    cap = _vmem_capacity_bytes()
    if cap >= 96 * 1024 * 1024:    # v5e / v6e: 128 MiB physical VMEM
        return 56 * 1024 * 1024, 96 * 1024 * 1024
    # v7x: 64 MiB per TensorCore -> ~40% working set, modest scoped limit.
    budget = int(cap * 0.40)
    return budget, min(int(cap * 0.75), 48 * 1024 * 1024)


def _pick_blocks(B, m, P, W, in_itemsize, w_itemsize, out_itemsize, budget,
                 block_m=None, block_b=None, p_chunk=128):
    """Choose (tm, tb) using PADDED block footprints (lane x128, sublane x8)."""
    P_pad = _round_up(P, 8)
    W_pad = _round_up(W, 8)
    pc_pad = min(P_pad, _round_up(min(p_chunk, P), 8))

    # series (lane) axis block: multiple of 128 unless it covers all of m
    if block_m is not None:
        tm = max(1, min(int(block_m), m))
        if tm < m:
            tm = max(128, (tm // 128) * 128)
    else:
        tm = m if m <= 1024 else 1024

    def fixed_bytes(tm_):
        tm_p = _round_up(tm_, 128)
        # weight + bias blocks, double-buffered by the pipeline
        return 2 * (W * P_pad + W_pad) * tm_p * w_itemsize

    while tm > 128 and fixed_bytes(tm) > budget // 2:
        tm = max(128, ((tm // 2) // 128) * 128)

    tm_pad = _round_up(tm, 128)
    fixed = fixed_bytes(tm)

    if block_b is not None:
        tb = max(1, min(int(block_b), B))
    else:
        per_b = (2 * P_pad * tm_pad * in_itemsize        # x block (double-buffered)
                 + 2 * W_pad * tm_pad * out_itemsize     # out block (double-buffered)
                 + pc_pad * tm_pad * (in_itemsize + 4)   # per-chunk product + f32 copy
                 + 2 * W_pad * tm_pad * 4)               # f32 accumulators / concat temp
        tb = (budget - fixed) // max(per_b, 1)
        tb = int(max(1, min(B, tb)))
    return tm, tb


def fr_model_forward(x, weight, bias, pre_win, *,
                     use_pallas=None, block_m=None, block_b=None, p_chunk=128):
    """x: [B, m, P], weight: [m, P, pre_win], bias: [m, pre_win].

    Returns [B, pre_win, m] (or [B, m] when pre_win == 1), matching FR_Model.forward.
    """
    B, m, P = x.shape
    W = int(pre_win)
    assert weight.shape == (m, P, W)
    assert bias.shape == (m, W)

    out_dtype = x.dtype
    in_itemsize = jnp.dtype(x.dtype).itemsize
    w_itemsize = jnp.dtype(weight.dtype).itemsize
    out_itemsize = jnp.dtype(out_dtype).itemsize

    if use_pallas is None:
        # Cost-based dispatch: below a few MiB of HBM traffic the fixed
        # pallas_call launch / pipeline prologue dominates; let XLA fuse.
        hbm_bytes = (x.size * in_itemsize
                     + weight.size * w_itemsize
                     + bias.size * jnp.dtype(bias.dtype).itemsize
                     + B * W * m * out_itemsize)
        use_pallas = hbm_bytes >= (4 * 1024 * 1024) and m >= 8

    if not use_pallas:
        # f32 accumulation so the fallback matches the Pallas path numerics.
        y = jnp.einsum("bmp,mpw->bwm", x, weight,
                       preferred_element_type=jnp.float32)
        y = (y + jnp.transpose(bias).astype(jnp.float32)[None]).astype(out_dtype)
        return y[:, 0, :] if W == 1 else y

    budget, vmem_limit = _vmem_plan()
    tm, tb = _pick_blocks(B, m, P, W, in_itemsize, w_itemsize, out_itemsize,
                          budget, block_m=block_m, block_b=block_b,
                          p_chunk=p_chunk)
    grid_m = pl.cdiv(m, tm)
    grid_b = pl.cdiv(B, tb)

    # Wrapper relayout: series axis m onto lanes, contraction axis P onto
    # sublanes.  The output already comes out in its final [B, W, m] layout.
    x_t = jnp.transpose(x, (0, 2, 1))          # (B, P, m)
    w_t = jnp.transpose(weight, (2, 1, 0))     # (W, P, m)
    b_t = jnp.transpose(bias, (1, 0))          # (W, m)

    out = pl.pallas_call(
        functools.partial(_fr_block_kernel, int(p_chunk)),
        out_shape=jax.ShapeDtypeStruct((B, W, m), out_dtype),
        grid_spec=pltpu.PrefetchScalarGridSpec(
            num_scalar_prefetch=0,
            # jb (batch chunk) is the inner, fastest axis -> the weight/bias
            # blocks, indexed by jm only, are fetched once per m-chunk and
            # reused across all batch chunks.
            grid=(grid_m, grid_b),
            in_specs=[
                pl.BlockSpec((tb, P, tm), lambda jm, jb: (jb, 0, jm)),   # x
                pl.BlockSpec((W, P, tm), lambda jm, jb: (0, 0, jm)),     # weight
                pl.BlockSpec((W, tm), lambda jm, jb: (0, jm)),           # bias
            ],
            out_specs=pl.BlockSpec((tb, W, tm), lambda jm, jb: (jb, 0, jm)),
        ),
        compiler_params=pltpu.CompilerParams(
            # jm "parallel" -> v7x megacore shards the series axis, keeping
            # each core's weight shard resident; jb "arbitrary" is always safe.
            dimension_semantics=("parallel", "arbitrary"),
            vmem_limit_bytes=vmem_limit,
        ),
    )(x_t, w_t, b_t)

    return out[:, 0, :] if W == 1 else out


if __name__ == "__main__":
    # Small shapes consistent with the module: p_list = [16, 16] -> p_allsum = 32,
    # no compress list, m = 320 series, pre_win = 3 prediction steps, batch = 4.
    B = 4
    m = 320
    p_list = [16, 16]
    P = int(sum(p_list))      # p_allsum = 32
    pre_win = 3

    key = jax.random.PRNGKey(0)
    k_x, k_w, k_b = jax.random.split(key, 3)

    # Deterministic parameter init mirroring __init__:
    # kaiming_uniform_(weight, fan_in, relu) -> U(-sqrt(6/fan_in), sqrt(6/fan_in)),
    # fan_in = weight.size(1) * weight.size(2) = P * pre_win.
    fan_in = P * pre_win
    w_bound = math.sqrt(6.0 / fan_in)
    weight = jax.random.uniform(k_w, (m, P, pre_win), jnp.float32, -w_bound, w_bound)
    b_bound = 1.0 / math.sqrt(fan_in)
    bias = jax.random.uniform(k_b, (m, pre_win), jnp.float32, -b_bound, b_bound)

    x = jax.random.normal(k_x, (B, m, P), jnp.float32)

    # Force the Pallas path with small blocks so multiple grid steps and a
    # partial edge block along m are exercised (m = 320 -> 128, 128, 64-partial),
    # plus weight reuse across two batch chunks.
    y = fr_model_forward(x, weight, bias, pre_win,
                         use_pallas=True, block_m=128, block_b=2)
    y = jax.block_until_ready(y)

    y_ref = (jnp.einsum("bmp,mpw->bwm", x, weight,
                        preferred_element_type=jnp.float32)
             + jnp.transpose(bias)[None])
    assert y.shape == (B, pre_win, m)
    assert jnp.allclose(y, y_ref, atol=1e-5, rtol=1e-5), float(jnp.max(jnp.abs(y - y_ref)))

    # pre_win == 1 through the Pallas kernel (output shape [B, m]).
    w1 = weight[:, :, :1]
    b1 = bias[:, :1]
    y1p = fr_model_forward(x, w1, b1, 1, use_pallas=True, block_m=128)
    y1p = jax.block_until_ready(y1p)
    y1p_ref = jnp.einsum("bmp,mp->bm", x, w1[:, :, 0],
                         preferred_element_type=jnp.float32) + b1[:, 0][None]
    assert y1p.shape == (B, m)
    assert jnp.allclose(y1p, y1p_ref, atol=1e-5, rtol=1e-5)

    # Single-block path (whole m on one lane block, auto tb).
    yf = fr_model_forward(x, weight, bias, pre_win, use_pallas=True)
    yf = jax.block_until_ready(yf)
    assert jnp.allclose(yf, y_ref, atol=1e-5, rtol=1e-5)

    # Tiny problem: cost-based auto-dispatch falls back to the fused einsum path.
    y1 = fr_model_forward(x[:2, :8], w1[:8], b1[:8], 1)
    y1 = jax.block_until_ready(y1)
    y1_ref = jnp.einsum("bmp,mp->bm", x[:2, :8], w1[:8, :, 0],
                        preferred_element_type=jnp.float32) + b1[:8, 0][None]
    assert y1.shape == (2, 8)
    assert jnp.allclose(y1, y1_ref, atol=1e-5, rtol=1e-5)

    print("KERNEL_OK")
</pallas_src>

<mosaic_0001>
module attributes {stable_mosaic.version = 11 : i64} {
  func.func @_fr_block_kernel(%arg0: i32, %arg1: i32, %arg2: memref<2x32x128xf32, #tpu.memory_space<vmem>>, %arg3: memref<3x32x128xf32, #tpu.memory_space<vmem>>, %arg4: memref<3x128xf32, #tpu.memory_space<vmem>>, %arg5: memref<2x3x128xf32, #tpu.memory_space<vmem>>) attributes {dimension_semantics = [#tpu.dimension_semantics<parallel>, #tpu.dimension_semantics<arbitrary>], iteration_bounds = array<i64: 3, 2>, scalar_prefetch = 0 : i64, scratch_operands = 0 : i64, tpu.core_type = #tpu.core_type<tc>, window_params = [{transform_indices = @transform_0, window_bounds = array<i64: 2, 32, 128>}, {transform_indices = @transform_1, window_bounds = array<i64: 3, 32, 128>}, {transform_indices = @transform_2, window_bounds = array<i64: 3, 128>}, {transform_indices = @transform_3, window_bounds = array<i64: 2, 3, 128>}]} {
    %c0 = arith.constant 0 : index
    %c0_0 = arith.constant 0 : index
    %c0_1 = arith.constant 0 : index
    %0 = vector.load %arg2[%c0, %c0_0, %c0_1] : memref<2x32x128xf32, #tpu.memory_space<vmem>>, vector<2x32x128xf32>
    %c0_2 = arith.constant 0 : index
    %c0_3 = arith.constant 0 : index
    %c0_4 = arith.constant 0 : index
    %1 = vector.load %arg3[%c0_2, %c0_3, %c0_4] : memref<3x32x128xf32, #tpu.memory_space<vmem>>, vector<1x32x128xf32>
    %2 = vector.broadcast %1 : vector<1x32x128xf32> to vector<2x32x128xf32>
    %3 = arith.mulf %0, %2 : vector<2x32x128xf32>
    %cst = arith.constant dense<0.000000e+00> : vector<2x128xf32>
    %4 = vector.multi_reduction <add>, %3, %cst [1] : vector<2x32x128xf32> to vector<2x128xf32>
    %5 = vector.shape_cast %4 : vector<2x128xf32> to vector<2x1x128xf32>
    %c1 = arith.constant 1 : index
    %c0_5 = arith.constant 0 : index
    %c0_6 = arith.constant 0 : index
    %6 = vector.load %arg3[%c1, %c0_5, %c0_6] : memref<3x32x128xf32, #tpu.memory_space<vmem>>, vector<1x32x128xf32>
    %7 = vector.broadcast %6 : vector<1x32x128xf32> to vector<2x32x128xf32>
    %8 = arith.mulf %0, %7 : vector<2x32x128xf32>
    %cst_7 = arith.constant dense<0.000000e+00> : vector<2x128xf32>
    %9 = vector.multi_reduction <add>, %8, %cst_7 [1] : vector<2x32x128xf32> to vector<2x128xf32>
    %10 = vector.shape_cast %9 : vector<2x128xf32> to vector<2x1x128xf32>
    %c2 = arith.constant 2 : index
    %c0_8 = arith.constant 0 : index
    %c0_9 = arith.constant 0 : index
    %11 = vector.load %arg3[%c2, %c0_8, %c0_9] : memref<3x32x128xf32, #tpu.memory_space<vmem>>, vector<1x32x128xf32>
    %12 = vector.broadcast %11 : vector<1x32x128xf32> to vector<2x32x128xf32>
    %13 = arith.mulf %0, %12 : vector<2x32x128xf32>
    %cst_10 = arith.constant dense<0.000000e+00> : vector<2x128xf32>
    %14 = vector.multi_reduction <add>, %13, %cst_10 [1] : vector<2x32x128xf32> to vector<2x128xf32>
    %15 = vector.shape_cast %14 : vector<2x128xf32> to vector<2x1x128xf32>
    %c0_11 = arith.constant 0 : index
    %c0_12 = arith.constant 0 : index
    %16 = vector.load %arg4[%c0_11, %c0_12] : memref<3x128xf32, #tpu.memory_space<vmem>>, vector<1x128xf32>
    %17 = vector.shape_cast %16 : vector<1x128xf32> to vector<1x1x128xf32>
    %18 = vector.broadcast %17 : vector<1x1x128xf32> to vector<2x1x128xf32>
    %19 = arith.addf %5, %18 : vector<2x1x128xf32>
    %c1_13 = arith.constant 1 : index
    %c0_14 = arith.constant 0 : index
    %20 = vector.load %arg4[%c1_13, %c0_14] : memref<3x128xf32, #tpu.memory_space<vmem>>, vector<1x128xf32>
    %21 = vector.shape_cast %20 : vector<1x128xf32> to vector<1x1x128xf32>
    %22 = vector.broadcast %21 : vector<1x1x128xf32> to vector<2x1x128xf32>
    %23 = arith.addf %10, %22 : vector<2x1x128xf32>
    %c2_15 = arith.constant 2 : index
    %c0_16 = arith.constant 0 : index
    %24 = vector.load %arg4[%c2_15, %c0_16] : memref<3x128xf32, #tpu.memory_space<vmem>>, vector<1x128xf32>
    %25 = vector.shape_cast %24 : vector<1x128xf32> to vector<1x1x128xf32>
    %26 = vector.broadcast %25 : vector<1x1x128xf32> to vector<2x1x128xf32>
    %27 = arith.addf %15, %26 : vector<2x1x128xf32>
    %28 = tpu.concatenate %19, %23, %27 in 1 : vector<2x1x128xf32>, vector<2x1x128xf32>, vector<2x1x128xf32> -> vector<2x3x128xf32>
    %c0_17 = arith.constant 0 : index
    %c0_18 = arith.constant 0 : index
    %c0_19 = arith.constant 0 : index
    %29 = vector.load %arg5[%c0_17, %c0_18, %c0_19] : memref<2x3x128xf32, #tpu.memory_space<vmem>>, vector<2x3x128xf32>
    tpu.vector_store %arg5[%c0_17, %c0_18, %c0_19], %28 {strides = array<i32>} : memref<2x3x128xf32, #tpu.memory_space<vmem>>, vector<2x3x128xf32>,
    return
  }
  func.func @transform_0(%arg0: i32, %arg1: i32) -> (i32, i32, i32) {
    %c0_i32 = arith.constant 0 : i32
    %c0_i32_0 = arith.constant 0 : i32
    return %arg1, %c0_i32, %arg0 : i32, i32, i32
  }
  func.func @transform_1(%arg0: i32, %arg1: i32) -> (i32, i32, i32) {
    %c0_i32 = arith.constant 0 : i32
    %c0_i32_0 = arith.constant 0 : i32
    %c0_i32_1 = arith.constant 0 : i32
    return %c0_i32, %c0_i32_0, %arg0 : i32, i32, i32
  }
  func.func @transform_2(%arg0: i32, %arg1: i32) -> (i32, i32) {
    %c0_i32 = arith.constant 0 : i32
    %c0_i32_0 = arith.constant 0 : i32
    return %c0_i32, %arg0 : i32, i32
  }
  func.func @transform_3(%arg0: i32, %arg1: i32) -> (i32, i32, i32) {
    %c0_i32 = arith.constant 0 : i32
    %c0_i32_0 = arith.constant 0 : i32
    return %arg1, %c0_i32, %arg0 : i32, i32, i32
  }
}

</mosaic_0001>

<bundles_post_ra>
// kernel: tpu_custom_call.1
= control target key start
LH: loop header
LB: loop body
LE: loop exit
PB: predicated region body
PF: predicated region fallthrough
CT: control target
= control target key end

     0   :  { %s1190_s0 = inlined_call_operand.hbm [shape: f32[4,32,320], index: 0, kind: input, shape index: {}]   ;;  %s1191_s1 = inlined_call_operand.hbm [shape: f32[3,32,320], index: 1, kind: input, shape index: {}]   ;;  %s1192_s2 = inlined_call_operand.hbm [shape: f32[3,320], index: 2, kind: input, shape index: {}]   ;;  %s1193_s3 = inlined_call_operand.vmem [shape: f32[4,3,320], index: 3, kind: output, shape index: {}]  }
   0x1   :  { %1203 = sst [smem:[#allocation17_spill]] %s1190_s0 }
   0x2   :  { %1204 = sst [smem:[#allocation18_spill]] %s1191_s1 }
   0x3   :  { %1205 = sst [smem:[#allocation19_spill]] %s1193_s3 }
   0x4   :  { %8 = vsyncpa [#allocation3], 0 }
   0x5   :  { %10 = vsyncpa [#allocation3 + $0x1], 0 }
   0x6   :  { %11 = vsyncpa [#allocation5], 0 }
   0x7   :  { %13 = vsyncpa [#allocation5 + $0x1], 0  ;;  %s931_s12 = smov 0   ;;  %s933_s13 = smov 0  }
   0x8   :  { %s935_s14 = smov 0   ;;  %s937_s15 = smov 0  }
   0x9   :  { %s939_s16 = smov 0   ;;  %s941_s17 = smov 0  }
   0xa   :  { %s943_s18 = smov 0   ;;  %s945_s19 = smov 0  }
   0xb   :  { %s947_s20 = smov 0   ;;  %s949_s21 = smov 0  }
   0xc   :  { %s951_s22 = smov 0  }
   0xd LB: > { %1206 = sst [smem:[#allocation10_spill]] %s887_s18  ;;  %s985_s23 = sadd.s32 4294967295, %s903_s22   ;;  %s903_s22 = sphi %s951_s22, %s19_s22   ;;  %s899_s21 = sphi %s949_s21, %s1243_s21   ;;  %s895_s20 = sphi %s947_s20, %s1234_s20   ;;  %s891_s19 = sphi %s945_s19, %s1242_s19   ;;  %s887_s18 = sphi %s943_s18, %s1233_s18   ;;  %s883_s17 = sphi %s941_s17, %s1241_s17   ;;  %s879_s16 = sphi %s939_s16, %s1240_s16   ;;  %s875_s15 = sphi %s937_s15, %s1239_s15   ;;  %s871_s14 = sphi %s935_s14, %s1238_s14   ;;  %s867_s13 = sphi %s933_s13, %s1237_s13   ;;  %s863_s12 = sphi %s931_s12, %s1236_s12  }
   0xe   : > { %1207 = sst [smem:[#allocation11_spill]] %s891_s19  ;;  %p48_p0 = scmp.eq.s32.totalorder %s903_s22, 0 }
   0xf   : > { %1208 = sst [smem:[#allocation12_spill]] %s895_s20  ;;  %p54_p1 = scmp.eq.s32.totalorder %s985_s23, 0 }
  0x10   : > { %s66_s24 = sadd.s32 1, %s871_s14  ;;  %p73_p2 = scmp.ne.s32.totalorder %s871_s14, %s867_s13 }
  0x11   : > { %p79_p3 = scmp.ne.s32.totalorder %s867_s13, %s863_s12  ;;  %p1194_p4 = scmp.lt.s32.totalorder %s903_s22, 6 }
  0x12   : > { %p75_p5 = por %p73_p2, %p48_p0  ;;  %s180_s26 = sand.u32 1, %s903_s22  }
  0x13   : > { %p998_p6 = por %p79_p3, %p54_p1  ;;  %s1198_s27 = sand.u32 1, %s871_s14  }
  0x14   : > { %s614_s28 = smul.u32 96, %s1198_s27  ;;  %s592_s29 = sshll.u32 %s899_s21, 7 }
  0x15   : > { %s1210_s1 = sld [smem:[#allocation18_spill]]  ;;  %p1014_p7 = pnand %p1194_p4, %p75_p5 }
  0x16   : > { %p595_p8 = scmp.ge.s32.totalorder %s903_s22, 1  ;;  %s184_s7 = scalar_lea.vmem [#allocation4], %s614_s28 }
  0x17   : > { %s190_s8 = sshll.u32 %s184_s7, 4  ;;  %p216_p9 = scmp.lt.s32.totalorder %s903_s22, 7  ;;  %s191_s8 = int_to_ptr.vmem [resolvable:$true] %s190_s8 }
  0x18   : > { %s1020_s9 = scalar_lea.sflag [#allocation5], %s180_s26  ;;  %p1202_p10 = pneg %p1014_p7 }
  0x19   : > { %s738_s10 = scalar_lea.vmem %s191_s8, 1536  ;;  %s905_s11 = smov [#allocation4]  }
  0x1a   : > { %p739_p11 = scmp.ne.s32.totalorder %s191_s8, %s738_s10  ;;  %s743_s12 = sshll.u32 %s905_s11, 4  ;;  %s744_s12 = int_to_ptr.vmem [resolvable:$false] %s743_s12 }
  0x1b   : > { %s1010_s5 = scalar_lea.hbm %s1210_s1, %s592_s29  ;;  %s745_s29 = scalar_lea.vmem %s744_s12, 3072 }
  0x1c   : > { %p741_p12 = pnand %p739_p11, %p1202_p10  ;;  %p746_p2 = scmp.lt.s32.totalorder %s191_s8, %s744_s12 }
  0x1d   : > { %p747_p3 = scmp.lt.s32.totalorder %s745_s29, %s738_s10 }
  0x1e   : > { %p742_p13 = pneg %p741_p12 }
  0x1f   : > { %p748_p5 = por %p747_p3, %p746_p2 }
  0x21   : > { %p749_p4 = pnand %p748_p5, %p742_p13 }
  0x23   : > { %752 = shalt.err (!%p749_p4)
}
  0x24   : > { %s1195_s28 = smov 384   ;;  %s1196_s26 = smov 128  }
  0x25   : > { %s1197_s30 = smov 8   ;;  %p1038_p4 = pnand %p595_p8, %p216_p9 }
  0x26   : > { %629 = dma.hbm_to_vmem [thread:$0]  (!%p1014_p7), %s1010_s5, 1536, %s191_s8, %s1020_s9, %s1195_s28, %s1196_s26, %s1197_s30  }
  0x27   : > { %s28_s7 = sadd.s32 1, %s895_s20  ;;  %s31_s10 = sadd.s32 1, %s899_s21 }
  0x28   : > { %p29_p11 = scmp.ge.s32.totalorder %s28_s7, 2  ;;  %s40_s11 = sadd.s32 1, %s883_s17 }
  0x29   : > { %p47_p12 = scmp.ne.s32.totalorder %s883_s17, %s879_s16  ;;  %p53_p13 = scmp.ne.s32.totalorder %s879_s16, %s875_s15 }
  0x2a   : > { %s1245_s7 = smov (%p29_p11, %s28_s7), 0  ;;  %s1247_s10 = smov (!%p29_p11, %s31_s10), %s899_s21 }
  0x2b   : > { %1213 = sst [smem:[#allocation13_spill]] %s1245_s7  ;;  %s35_s5 = ssub.s32 %s895_s20, %s1245_s7 }
  0x2c   : > { %p1054_p8 = por %p48_p0, %p47_p12  ;;  %p33_p9 = scmp.ge.s32.totalorder %s1247_s10, 3 }
  0x2d   : > { %p131_p2 = scmp.eq.s32.totalorder %s985_s23, 5  ;;  %s157_s12 = sand.u32 1, %s883_s17  }
  0x2e   : > { %s1249_s10 = smov (%p33_p9, %s1247_s10), 0  ;;  %p1066_p3 = por %p54_p1, %p53_p13 }
  0x2f   : > { %1215 = sst [smem:[#allocation14_spill]] %s1249_s10  ;;  %p1070_p5 = por %p131_p2, %p47_p12 }
  0x30   : > { %s36_s26 = ssub.s32 %s899_s21, %s1249_s10  ;;  %s588_s30 = sshll.u32 %s157_s12, 6 }
  0x31   : > { %s37_s15 = sor.u32 %s36_s26, %s35_s5  ;;  %p64_p0 = scmp.eq.s32.totalorder %s36_s26, 0 }
  0x32   : > { %p38_p11 = scmp.eq.s32.totalorder %s37_s15, 0  ;;  %s613_s7 = smul.u32 24, %s895_s20 }
  0x33   : > { %s1079_s27 = scalar_select %p64_p0, %s871_s14, %s66_s24  }
  0x34   : > { %s1082_s1 = scalar_select %p38_p11, %s883_s17, %s40_s11  }
  0x35   : > { %1218 = sst [smem:[#allocation15_spill]] %s1079_s27  ;;  %s161_s3 = scalar_lea.vmem [#allocation2], %s588_s30 }
  0x36   : > { %1219 = sst [smem:[#allocation16_spill]] %s1082_s1  ;;  %s170_s19 = sshll.u32 %s161_s3, 4  ;;  %s171_s19 = int_to_ptr.vmem [resolvable:$true] %s170_s19 }
  0x37   : > { %p1220_p1 = scmp.lt.s32.totalorder %s903_s22, 6  ;;  %s167_s10 = sadd.s32 %s899_s21, %s613_s7 }
  0x38   : > { %s591_s26 = sshll.u32 %s167_s10, 7  ;;  %s1222_s0 = sld [smem:[#allocation17_spill]] }
  0x39   : > { %p1089_p12 = pnand %p1220_p1, %p1054_p8  ;;  %s1223_s27 = sand.u32 1, %s871_s14  }
  0x3a   : > { %s593_s11 = sshll.u32 %s1223_s27, 2  ;;  %s158_s1 = scalar_lea.sflag [#allocation3], %s157_s12 }
  0x3b   : > { %p755_p9 = pneg %p1089_p12  ;;  %s766_s3 = scalar_lea.vmem %s171_s19, 1024 }
  0x3c   : > { %p767_p13 = scmp.ne.s32.totalorder %s171_s19, %s766_s3  ;;  %s909_s30 = smov [#allocation2]  }
  0x3d   : > { %s771_s8 = sshll.u32 %s909_s30, 4  ;;  %s772_s8 = int_to_ptr.vmem [resolvable:$false] %s771_s8 }
  0x3e   : > { %s169_s24 = scalar_lea.hbm %s1222_s0, %s591_s26  ;;  %p769_p2 = pnand %p767_p13, %p755_p9 }
  0x3f   : > { %s773_s20 = scalar_lea.vmem %s772_s8, 2048  ;;  %p774_p0 = scmp.lt.s32.totalorder %s171_s19, %s772_s8 }
  0x40   : > { %p770_p8 = pneg %p769_p2  ;;  %p775_p11 = scmp.lt.s32.totalorder %s773_s20, %s766_s3 }
  0x42   : > { %p776_p1 = por %p775_p11, %p774_p0 }
  0x44   : > { %p777_p10 = pnand %p776_p1, %p770_p8 }
  0x46   : > { %780 = shalt.err (!%p777_p10)
}
  0x47   : > { %s1224_s7 = smov 8   ;;  %s1225_s27 = smov 128  }
  0x48   : > { %s1226_s10 = smov 384   ;;  %s594_s12 = sshll.u32 %s899_s21, 6 }
  0x49   : > { %626 = dma.hbm_to_vmem [thread:$0]  (!%p1089_p12), %s169_s24, 1024, %s171_s19, %s158_s1, %s1226_s10, %s1225_s27, %s1224_s7  }
  0x4a   : > { %s209_s15 = scalar_lea.hbm %s1192_s2, %s594_s12  ;;  %s204_s30 = scalar_lea.vmem [#allocation6], %s593_s11 }
  0x4b   : > { %s211_s0 = sshll.u32 %s204_s30, 4  ;;  %p1227_p10 = pneg %p1014_p7  ;;  %s212_s0 = int_to_ptr.vmem [resolvable:$true] %s211_s0 }
  0x4c   : > { %s794_s20 = scalar_lea.vmem %s212_s0, 64  ;;  %s910_s18 = smov [#allocation6]  }
  0x4d   : > { %p795_p9 = scmp.ne.s32.totalorder %s212_s0, %s794_s20  ;;  %s799_s3 = sshll.u32 %s910_s18, 4  ;;  %s800_s3 = int_to_ptr.vmem [resolvable:$false] %s799_s3 }
  0x4e   : > { %s801_s8 = scalar_lea.vmem %s800_s3, 128  ;;  %p802_p8 = scmp.lt.s32.totalorder %s212_s0, %s800_s3 }
  0x4f   : > { %p797_p13 = pnand %p795_p9, %p1227_p10  ;;  %p803_p12 = scmp.lt.s32.totalorder %s801_s8, %s794_s20 }
  0x51   : > { %p798_p2 = pneg %p797_p13  ;;  %p804_p0 = por %p803_p12, %p802_p8 }
  0x53   : > { %p805_p11 = pnand %p804_p0, %p798_p2 }
  0x55   : > { %808 = shalt.err (!%p805_p11)
}
  0x56   : > { %632 = dma.hbm_to_vmem [thread:$0]  (!%p1014_p7), %s209_s15, 64, %s212_s0, %s1020_s9  }
  0x57   : > { %220 = sbr.rel (%p1038_p4) target bundleno = 143 (0x8f), region = 32  ;;  %s1119_s1 = sand.u32 (!%p1038_p4), 1, %s879_s16  }
  0x58   : > { %s596_s19 = sshll.u32 (!%p1038_p4), %s1119_s1, 6  ;;  %s223_s24 = scalar_lea.sflag (!%p1038_p4), [#allocation3], %s1119_s1 }
  0x59   : > { %s1123_s11 = scalar_lea.vmem (!%p1038_p4), [#allocation2], %s596_s19 }
  0x5c   : > { %854 = dma.done.wait (%p1066_p3), %s223_s24, 1024  }
  0x5d   : > { %856 = vsyncadd (%p1066_p3), %s223_s24, 4294966272  ;;  %s231_s0 = sand.u32 1, %s985_s23   ;;  %s233_s6 = sand.u32 1, %s867_s13  }
  0x5e   : > { %s615_s9 = smul.u32 96, %s233_s6  ;;  %s232_s4 = scalar_lea.sflag [#allocation5], %s231_s0 }
  0x60   : > { %s235_s7 = scalar_lea.vmem [#allocation4], %s615_s9 }
  0x61   : > { %858 = dma.done.wait (%p998_p6), %s232_s4, 1600  }
  0x62   : > { %860 = vsyncadd (%p998_p6), %s232_s4, 4294965696  ;;  %v278_v0 = vld [vmem:[%s1123_s11] sm:$0xff]  ;;  %v279_v1 = vld [vmem:[%s1123_s11 + $0x8] sm:$0xff]  ;;  %s597_s23 = sshll.u32 %s233_s6, 2  ;;  %s598_s29 = sshll.u32 %s1119_s1, 3  ;;  %vm399_vm0 = vcmask 1040384  }
  0x63   : > { %v280_v2 = vld [vmem:[%s1123_s11 + $0x10] sm:$0xff]  ;;  %v281_v3 = vld [vmem:[%s1123_s11 + $0x18] sm:$0xff]  ;;  %v286_v4 = vld [vmem:[%s235_s7] sm:$0xff]  ;;  %s244_s25 = scalar_lea.vmem [#allocation6], %s597_s23  ;;  %vm402_vm1 = vcmask 1041408   ;;  %s275_s27 = scalar_lea.vmem [#allocation7], %s598_s29 }
  0x64   : > { %v287_v5 = vld [vmem:[%s235_s7 + $0x8] sm:$0xff]  ;;  %v288_v6 = vld [vmem:[%s235_s7 + $0x10] sm:$0xff]  ;;  %v289_v7 = vld [vmem:[%s235_s7 + $0x18] sm:$0xff]  ;;  %v290_v8 = vmul.f32 %v286_v4, %v278_v0  ;;  %s1228_s10 = sld [smem:[#allocation10_spill]] (%p1070_p5) }
  0x65   : > { %v291_v9 = vmul.f32 %v287_v5, %v279_v1  ;;  %v599_v10 = vld [vmem:[%s235_s7 + $0x20] sm:$0xff]  ;;  %v292_v11 = vmul.f32 %v288_v6, %v280_v2  ;;  %v600_v12 = vld [vmem:[%s235_s7 + $0x28] sm:$0xff]  ;;  %v601_v13 = vld [vmem:[%s235_s7 + $0x30] sm:$0xff]  ;;  %v293_v16 = vmul.f32 %v289_v7, %v281_v3  ;;  %s1229_s12 = sld [smem:[#allocation11_spill]] (%p1070_p5) }
  0x66   : > { %v602_v14 = vld [vmem:[%s235_s7 + $0x38] sm:$0xff]  ;;  %v321_v15 = vmul.f32 %v599_v10, %v278_v0  ;;  %v322_v18 = vmul.f32 %v600_v12, %v279_v1  ;;  %v323_v19 = vmul.f32 %v601_v13, %v280_v2  ;;  %v603_v20 = vld [vmem:[%s235_s7 + $0x40] sm:$0xff]  ;;  %v604_v21 = vld [vmem:[%s235_s7 + $0x48] sm:$0xff]  ;;  %s1230_s18 = sld [smem:[#allocation19_spill]] (%p1070_p5) }
  0x67   : > { %v298_v17 = vadd.f32 %v291_v9, %v290_v8  ;;  %v605_v22 = vld [vmem:[%s235_s7 + $0x50] sm:$0xff]  ;;  %v606_v23 = vld [vmem:[%s235_s7 + $0x58] sm:$0xff]  ;;  %v352_v24 = vmul.f32 %v603_v20, %v278_v0  ;;  %v353_v25 = vmul.f32 %v604_v21, %v279_v1  ;;  %v324_v28 = vmul.f32 %v602_v14, %v281_v3  ;;  %v282_v31 = vld [vmem:[%s1123_s11 + $0x20] sm:$0xff] }
  0x68   : > { %v354_v26 = vmul.f32 %v605_v22, %v280_v2  ;;  %v329_v29 = vadd.f32 %v322_v18, %v321_v15  ;;  %v355_v30 = vmul.f32 %v606_v23, %v281_v3  ;;  %v283_v32 = vld [vmem:[%s1123_s11 + $0x28] sm:$0xff]  ;;  %v284_v34 = vld [vmem:[%s1123_s11 + $0x30] sm:$0xff]  ;;  %v285_v35 = vld [vmem:[%s1123_s11 + $0x38] sm:$0xff]  ;;  %v294_v36 = vmul.f32 %v286_v4, %v282_v31 }
  0x69   : > { %v299_v27 = vadd.f32 %v298_v17, %v292_v11  ;;  %v360_v33 = vadd.f32 %v353_v25, %v352_v24  ;;  %v295_v37 = vmul.f32 %v287_v5, %v283_v32  ;;  %v325_v38 = vmul.f32 %v599_v10, %v282_v31 }
  0x6a   : > { %v330_v40 = vadd.f32 %v329_v29, %v323_v19  ;;  %v296_v41 = vmul.f32 %v288_v6, %v284_v34  ;;  %v297_v42 = vmul.f32 %v289_v7, %v285_v35  ;;  %v326_v45 = vmul.f32 %v600_v12, %v283_v32  ;;  %s616_s26 = smul.u32 (%p1070_p5), 6, %s1228_s10 }
  0x6b   : > { %v300_v39 = vadd.f32 %v299_v27, %v293_v16  ;;  %v361_v43 = vadd.f32 %v360_v33, %v354_v26  ;;  %v307_v44 = vadd.f32 %v295_v37, %v294_v36  ;;  %v327_v46 = vmul.f32 %v601_v13, %v284_v34  ;;  %v384_v26 = vld [vmem:[%s244_s25 + $0x2] sm:$0x1] }
  0x6c   : > { %v331_v48 = vadd.f32 %v330_v40, %v324_v28  ;;  %v328_v49 = vmul.f32 %v602_v14, %v285_v35  ;;  %v356_v50 = vmul.f32 %v603_v20, %v282_v31  ;;  %v338_v53 = vadd.f32 %v326_v45, %v325_v38  ;;  %v378_v20 = vld [vmem:[%s244_s25] sm:$0x1]  ;;  %s416_s5 = sadd.s32 (%p1070_p5), %s1229_s12, %s616_s26 }
  0x6d   : > { %v301_v47 = vrot.slane %v300_v39, 4  ;;  %v362_v51 = vadd.f32 %v361_v43, %v355_v30  ;;  %v308_v52 = vadd.f32 %v307_v44, %v296_v41  ;;  %v357_v54 = vmul.f32 %v604_v21, %v283_v32  ;;  %v381_v21 = vld [vmem:[%s244_s25 + $0x1] sm:$0x1]  ;;  %s610_s15 = sshll.u32 (%p1070_p5), %s416_s5, 2 }
  0x6e   : > { %v332_v56 = vrot.slane %v331_v48, 4  ;;  %v358_v57 = vmul.f32 %v605_v22, %v284_v34  ;;  %v359_v58 = vmul.f32 %v606_v23, %v285_v35  ;;  %v339_v61 = vadd.f32 %v338_v53, %v327_v46  ;;  %s418_s3 = scalar_lea.vmem (%p1070_p5), %s1230_s18, %s610_s15 }
  0x6f   : > { %v302_v55 = vadd.f32 %v301_v47, %v300_v39  ;;  %v363_v59 = vrot.slane %v362_v51, 4  ;;  %v309_v60 = vadd.f32 %v308_v52, %v297_v42  ;;  %v369_v62 = vadd.f32 %v357_v54, %v356_v50 }
  0x70   : > { %v333_v0 = vadd.f32 %v332_v56, %v331_v48  ;;  %v340_v3 = vadd.f32 %v339_v61, %v328_v49 }
  0x71   : > { %v303_v63 = vrot.slane %v302_v55, 2  ;;  %v364_v1 = vadd.f32 %v363_v59, %v362_v51  ;;  %v310_v2 = vrot.slane %v309_v60, 4  ;;  %v370_v4 = vadd.f32 %v369_v62, %v358_v57 }
  0x72   : > { %v334_v6 = vrot.slane %v333_v0, 2  ;;  %v341_v9 = vrot.slane %v340_v3, 4 }
  0x73   : > { %v304_v5 = vadd.f32 %v303_v63, %v302_v55  ;;  %v365_v7 = vrot.slane %v364_v1, 2  ;;  %v311_v8 = vadd.f32 %v310_v2, %v309_v60  ;;  %v371_v10 = vadd.f32 %v370_v4, %v359_v58 }
  0x74   : > { %v335_v12 = vadd.f32 %v334_v6, %v333_v0  ;;  %v342_v15 = vadd.f32 %v341_v9, %v340_v3 }
  0x75   : > { %v305_v11 = vrot.slane %v304_v5, 1  ;;  %v366_v13 = vadd.f32 %v365_v7, %v364_v1  ;;  %v312_v14 = vrot.slane %v311_v8, 2  ;;  %v372_v16 = vrot.slane %v371_v10, 4 }
  0x76   : > { %v336_v18 = vrot.slane %v335_v12, 1  ;;  %v343_v23 = vrot.slane %v342_v15, 2 }
  0x77   : > { %v306_v17 = vadd.f32 %v305_v11, %v304_v5  ;;  %v367_v19 = vrot.slane %v366_v13, 1  ;;  %v313_v22 = vadd.f32 %v312_v14, %v311_v8  ;;  %v373_v24 = vadd.f32 %v372_v16, %v371_v10 }
  0x78   : > { %v337_v25 = vadd.f32 %v336_v18, %v335_v12  ;;  %v344_v29 = vadd.f32 %v343_v23, %v342_v15 }
  0x79   : > { %v368_v27 = vadd.f32 %v367_v19, %v366_v13  ;;  %v314_v28 = vrot.slane %v313_v22, 1  ;;  %v374_v30 = vrot.slane %v373_v24, 2  ;;  %v379_v31 = vadd.f32 %v378_v20, %v306_v17 }
  0x7a   : > { %v382_v32 = vadd.f32 %v381_v21, %v337_v25  ;;  %v345_v35 = vrot.slane %v344_v29, 1 }
  0x7b   : > { %v385_v33 = vadd.f32 %v384_v26, %v368_v27  ;;  %v315_v34 = vadd.f32 %v314_v28, %v313_v22  ;;  %v375_v36 = vadd.f32 %v374_v30, %v373_v24 }
  0x7c   : > { %v389_v37 = vrot.slane %v382_v32, 7  ;;  %v346_v39 = vadd.f32 %v345_v35, %v344_v29 }
  0x7d   : > { %v395_v38 = vrot.slane %v385_v33, 6  ;;  %v376_v40 = vrot.slane %v375_v36, 1  ;;  %v380_v44 = vadd.f32 %v378_v20, %v315_v34 }
  0x7e   : > { %v400_v41 = vsel %vm399_vm0, %v379_v31, %v389_v37  ;;  %v383_v45 = vadd.f32 %v381_v21, %v346_v39 }
  0x7f   : > { %v403_v42 = vsel %vm402_vm1, %v400_v41, %v395_v38  ;;  %v377_v43 = vadd.f32 %v376_v40, %v375_v36 }
  0x80   : > { %405 = vst [vmem:[%s275_s27] sm:$0x7] %v403_v42  ;;  %v390_v47 = vrot.slane %v383_v45, 7 }
  0x81   : > { %v386_v46 = vadd.f32 %v384_v26, %v377_v43 }
  0x82   : > { %v401_v49 = vsel %vm399_vm0, %v380_v44, %v390_v47  ;;  %413 = sbr.rel (!%p1070_p5) target bundleno = 143 (0x8f), region = 48 }
  0x83   : > { %v396_v48 = vrot.slane %v386_v46, 6 }
  0x85   : > { %v404_v50 = vsel %vm402_vm1, %v401_v49, %v396_v48 }
  0x86   : > { %406 = vst [vmem:[%s275_s27 + $0x4] sm:$0x7] %v404_v50 }
  0x87   : > { %v435_v51 = vld [vmem:[%s275_s27] sm:$0xf] }
  0x88   : > { %436 = vst [vmem:[%s418_s3] sm:$0xf] %v435_v51 }
  0x8d   : > { %v437_v52 = vld [vmem:[%s275_s27 + $0x4] sm:$0xf] }
  0x8e   : > { %438 = vst [vmem:[%s418_s3 + $0xc] sm:$0xf] %v437_v52 }
  0x8f PF: > { %s19_s22 = sadd.s32 1, %s903_s22   ;;  %s1231_s28 = sld [smem:[#allocation15_spill]] }
  0x90   : > { %p16_p6 = scmp.ge.s32.totalorder %s19_s22, 8   ;;  %s1232_s8 = sld [smem:[#allocation16_spill]] }
  0x91   : > { %s1233_s18 = sld [smem:[#allocation12_spill]]  ;;  %s1236_s12 = smov %s867_s13 }
  0x92   : > { %s1234_s20 = sld [smem:[#allocation13_spill]]  ;;  %s1237_s13 = smov %s871_s14 }
  0x93   : > { %s1235_s1 = sld [smem:[#allocation14_spill]]  ;;  %s1239_s15 = smov %s879_s16 }
  0x94   : > { %s1240_s16 = smov %s883_s17  ;;  %s1242_s19 = smov %s899_s21 }
  0x95   : > { %s1238_s14 = smov %s1231_s28  ;;  %18 = sbr.rel (!%p16_p6) target bundleno = 13 (0xd), region = 139 }
  0x96   : > { %s1241_s17 = smov %s1232_s8 }
  0x99   : > { %s1243_s21 = smov %s1235_s1 }
  0x9a   :  { %476 = vsyncpa [#allocation3], 1 }
  0x9b   :  { %478 = vsyncpa [#allocation3 + $0x1], 1 }
  0x9c   :  { %479 = vsyncpa [#allocation5], 1 }
  0x9d   :  { %481 = vsyncpa [#allocation5 + $0x1], 1 }

</bundles_post_ra>
